<compile_context>
chip_gen: v7x
topology: tpu7x:2x2x1
jax: 0.10.0
libtpu: 0.0.40
codegen_flags: <defaults>
</compile_context>

<pallas_src>
import math

import jax
import jax.numpy as jnp
from jax.experimental import pallas as pl
from jax.experimental.pallas import tpu as pltpu

# Lane-aligned (padded) layer widths.
H1_PAD = 512        # 500 -> 512
H2_PAD = 384        # 300 -> 384
OUT_COLS = 8        # 2   -> 8  (narrow full-last-dim output block)
OUT_TRUE = 2
DEFAULT_BATCH_TILE = 1024


def _round_up(x, m):
    return (x + m - 1) // m * m


def _choose_tb(B, batch_tile):
    """Batch tile: multiple of 16 (bf16 sublane granule), capped at batch_tile."""
    if B >= batch_tile:
        return _round_up(batch_tile, 16)
    return _round_up(max(B, 16), 16)


def mlp_kernel(x_ref, w1_ref, b1_ref, w2_ref, b2_ref, w3_ref, b3_ref, o_ref):
    """One batch tile of the fused 3-layer MLP.

    x_ref : (TB, F)           f32  (cast to bf16 in-kernel for the MXU)
    w1_ref: (F, H1_PAD)       bf16
    w2_ref: (H1_PAD, H2_PAD)  bf16 (zero-padded)
    w3_ref: (H2_PAD, OUT_COLS) bf16 (zero-padded)
    b*_ref: (1, out)          f32  (zero-padded)
    o_ref : (TB, OUT_COLS)    f32  (only lanes [:2] are meaningful)
    """
    x = x_ref[...].astype(jnp.bfloat16)
    # fc1 + ReLU: bf16 on the MXU, f32 accumulate, f32 elementwise on the VPU.
    h1 = jnp.dot(x, w1_ref[...], preferred_element_type=jnp.float32) + b1_ref[...]
    h1 = jnp.maximum(h1, 0.0).astype(jnp.bfloat16)
    # fc2 + ReLU
    h2 = jnp.dot(h1, w2_ref[...], preferred_element_type=jnp.float32) + b2_ref[...]
    h2 = jnp.maximum(h2, 0.0).astype(jnp.bfloat16)
    # fc3 (no activation), narrow 8-lane output
    o_ref[...] = (
        jnp.dot(h2, w3_ref[...], preferred_element_type=jnp.float32) + b3_ref[...]
    )


def net_forward(x, params, *, batch_tile=DEFAULT_BATCH_TILE):
    """x: (B, n_feature) float32. params: bf16 weights + f32 biases (see init_params).

    Returns (B, 2) float32 logits, matching PyTorch Net.forward semantics.
    """
    B, F = x.shape
    assert params["w1"].shape[0] == F, "feature width mismatch with params"

    TB = _choose_tb(B, batch_tile)
    B_pad = _round_up(B, TB)
    num_tiles = B_pad // TB

    # Only pad the batch dim (zeros); feature lanes are passed through as-is.
    x_p = x if B_pad == B else jnp.pad(x, ((0, B_pad - B), (0, 0)))

    batch_tiled = lambda i: (i, 0)   # activation / output tiles march over batch
    resident = lambda i: (0, 0)      # weights & biases pinned in VMEM across steps

    flops = 2 * B_pad * (F * H1_PAD + H1_PAD * H2_PAD + H2_PAD * OUT_COLS)
    bytes_accessed = (
        x_p.size * x_p.dtype.itemsize
        + sum(int(v.size) * v.dtype.itemsize for v in params.values())
        + B_pad * OUT_COLS * 4
    )

    def run(dim_sem):
        return pl.pallas_call(
            mlp_kernel,
            out_shape=jax.ShapeDtypeStruct((B_pad, OUT_COLS), jnp.float32),
            grid=(num_tiles,),
            in_specs=[
                pl.BlockSpec((TB, F), batch_tiled),
                pl.BlockSpec((F, H1_PAD), resident),
                pl.BlockSpec((1, H1_PAD), resident),
                pl.BlockSpec((H1_PAD, H2_PAD), resident),
                pl.BlockSpec((1, H2_PAD), resident),
                pl.BlockSpec((H2_PAD, OUT_COLS), resident),
                pl.BlockSpec((1, OUT_COLS), resident),
            ],
            out_specs=pl.BlockSpec((TB, OUT_COLS), batch_tiled),
            compiler_params=pltpu.CompilerParams(dimension_semantics=dim_sem),
            cost_estimate=pl.CostEstimate(
                flops=flops, transcendentals=0, bytes_accessed=bytes_accessed
            ),
        )(
            x_p,
            params["w1"], params["b1"],
            params["w2"], params["b2"],
            params["w3"], params["b3"],
        )

    core_parallel = getattr(pltpu, "CORE_PARALLEL", None)
    if num_tiles > 1 and core_parallel is not None:
        # v7x: actually shard batch tiles across the two TensorCores. Output
        # tiles are disjoint per grid step, so this is race-free. Fall back to
        # plain "parallel" on builds/chips where core-parallel does not lower.
        try:
            out = run((core_parallel,))
        except Exception:  # pragma: no cover - lowering fallback
            out = run(("parallel",))
    else:
        out = run(("arbitrary",))

    # Strip batch padding and the zero-padded output lanes.
    return out[:B, :OUT_TRUE]


def init_params(key, n_feature):
    """nn.Linear-style init (uniform +/- 1/sqrt(fan_in)), padded to TPU-friendly
    shapes. Weights are stored (in_features, out_features) — transposed vs torch —
    and cast to bf16 for the MXU; biases stay f32 as (1, out_pad).

    Returns (kernel_params, ref_params): ref_params are the unpadded f32 copies
    used by the pure-JAX reference.
    """
    true_dims = [(n_feature, 500), (500, 300), (300, OUT_TRUE)]
    pad_dims = [(n_feature, H1_PAD), (H1_PAD, H2_PAD), (H2_PAD, OUT_COLS)]

    kparams, rparams = {}, {}
    keys = jax.random.split(key, 2 * len(true_dims))
    for i, ((fi, fo), (pi, po)) in enumerate(zip(true_dims, pad_dims)):
        bound = 1.0 / math.sqrt(fi)
        w = jax.random.uniform(keys[2 * i], (fi, fo), jnp.float32, -bound, bound)
        b = jax.random.uniform(keys[2 * i + 1], (1, fo), jnp.float32, -bound, bound)
        rparams[f"w{i + 1}"] = w
        rparams[f"b{i + 1}"] = b
        w_pad = jnp.zeros((pi, po), jnp.float32).at[:fi, :fo].set(w)
        b_pad = jnp.zeros((1, po), jnp.float32).at[:, :fo].set(b)
        kparams[f"w{i + 1}"] = w_pad.astype(jnp.bfloat16)
        kparams[f"b{i + 1}"] = b_pad
    return kparams, rparams


def net_forward_ref(x, ref_params):
    """Pure f32 reference equivalent to the PyTorch module."""
    h1 = jnp.maximum(x @ ref_params["w1"] + ref_params["b1"], 0.0)
    h2 = jnp.maximum(h1 @ ref_params["w2"] + ref_params["b2"], 0.0)
    return h2 @ ref_params["w3"] + ref_params["b3"]


def net_forward_ref_bf16(x, kparams):
    """Reference matching the kernel's bf16-input / f32-accumulate arithmetic."""
    xb = x.astype(jnp.bfloat16)
    h1 = jnp.maximum(
        jnp.dot(xb, kparams["w1"], preferred_element_type=jnp.float32)
        + kparams["b1"], 0.0,
    ).astype(jnp.bfloat16)
    h2 = jnp.maximum(
        jnp.dot(h1, kparams["w2"], preferred_element_type=jnp.float32)
        + kparams["b2"], 0.0,
    ).astype(jnp.bfloat16)
    out = (
        jnp.dot(h2, kparams["w3"], preferred_element_type=jnp.float32)
        + kparams["b3"]
    )
    return out[:, :OUT_TRUE]


# TODO(synk): eval_layer_output / get_grad are training-time bookkeeping on the
# PyTorch module, not part of the forward pass, and are intentionally not ported.

if __name__ == "__main__":
    key = jax.random.PRNGKey(0)
    k_param, k_x = jax.random.split(key)

    n_feature = 32   # small tabular feature width, consistent with the adult model
    batch = 8

    kparams, rparams = init_params(k_param, n_feature)
    x = jax.random.normal(k_x, (batch, n_feature), jnp.float32)

    out = jax.block_until_ready(net_forward(x, kparams))
    assert out.shape == (batch, 2)

    # Tight check vs a JAX reference using identical bf16-in / f32-accumulate math.
    ref_bf16 = net_forward_ref_bf16(x, kparams)
    assert jnp.allclose(out, ref_bf16, atol=2e-3, rtol=2e-3), \
        "mismatch vs bf16-matched reference"

    # Looser sanity check vs the full-f32 PyTorch-equivalent reference.
    ref_f32 = net_forward_ref(x, rparams)
    assert jnp.allclose(out, ref_f32, atol=5e-2, rtol=5e-2), \
        "mismatch vs f32 reference"

    # Multi-tile path: exercises batch padding, resident weights across grid
    # steps, and the core-parallel batch split (on v7x).
    x_big = jax.random.normal(jax.random.PRNGKey(1), (160, n_feature), jnp.float32)
    out_big = jax.block_until_ready(net_forward(x_big, kparams, batch_tile=64))
    assert out_big.shape == (160, 2)
    ref_big = net_forward_ref_bf16(x_big, kparams)
    assert jnp.allclose(out_big, ref_big, atol=2e-3, rtol=2e-3), \
        "multi-tile mismatch vs bf16-matched reference"

    print("KERNEL_OK")
</pallas_src>

<mosaic_0001>
module attributes {stable_mosaic.version = 11 : i64} {
  func.func @mlp_kernel(%arg0: i32, %arg1: memref<16x32xf32, #tpu.memory_space<vmem>>, %arg2: memref<32x512xbf16, #tpu.memory_space<vmem>>, %arg3: memref<1x512xf32, #tpu.memory_space<vmem>>, %arg4: memref<512x384xbf16, #tpu.memory_space<vmem>>, %arg5: memref<1x384xf32, #tpu.memory_space<vmem>>, %arg6: memref<384x8xbf16, #tpu.memory_space<vmem>>, %arg7: memref<1x8xf32, #tpu.memory_space<vmem>>, %arg8: memref<16x8xf32, #tpu.memory_space<vmem>>) attributes {dimension_semantics = [#tpu.dimension_semantics<arbitrary>], iteration_bounds = array<i64: 1>, scalar_prefetch = 0 : i64, scratch_operands = 0 : i64, tpu.core_type = #tpu.core_type<tc>, window_params = [{transform_indices = @transform_0, window_bounds = array<i64: 16, 32>}, {pipeline_mode = #tpu.pipeline_mode<synchronous>, transform_indices = @transform_1, window_bounds = array<i64: 32, 512>}, {pipeline_mode = #tpu.pipeline_mode<synchronous>, transform_indices = @transform_2, window_bounds = array<i64: 1, 512>}, {pipeline_mode = #tpu.pipeline_mode<synchronous>, transform_indices = @transform_3, window_bounds = array<i64: 512, 384>}, {pipeline_mode = #tpu.pipeline_mode<synchronous>, transform_indices = @transform_4, window_bounds = array<i64: 1, 384>}, {pipeline_mode = #tpu.pipeline_mode<synchronous>, transform_indices = @transform_5, window_bounds = array<i64: 384, 8>}, {pipeline_mode = #tpu.pipeline_mode<synchronous>, transform_indices = @transform_6, window_bounds = array<i64: 1, 8>}, {transform_indices = @transform_7, window_bounds = array<i64: 16, 8>}]} {
    %c0 = arith.constant 0 : index
    %c0_0 = arith.constant 0 : index
    %0 = vector.load %arg1[%c0, %c0_0] : memref<16x32xf32, #tpu.memory_space<vmem>>, vector<16x32xf32>
    %1 = arith.truncf %0 : vector<16x32xf32> to vector<16x32xbf16>
    %c0_1 = arith.constant 0 : index
    %c0_2 = arith.constant 0 : index
    %2 = vector.load %arg2[%c0_1, %c0_2] : memref<32x512xbf16, #tpu.memory_space<vmem>>, vector<32x512xbf16>
    %cst = arith.constant dense<0.000000e+00> : vector<16x512xf32>
    %3 = tpu.matmul %1, %2, %cst {dimension_numbers = #tpu.dot_dimension_numbers<[1], [0], [0], [1], [0, 0, 1, 1], [], []>} : vector<16x32xbf16>, vector<32x512xbf16>, vector<16x512xf32> -> vector<16x512xf32>
    %c0_3 = arith.constant 0 : index
    %c0_4 = arith.constant 0 : index
    %4 = vector.load %arg3[%c0_3, %c0_4] : memref<1x512xf32, #tpu.memory_space<vmem>>, vector<1x512xf32>
    %5 = vector.broadcast %4 : vector<1x512xf32> to vector<16x512xf32>
    %6 = arith.addf %3, %5 : vector<16x512xf32>
    %cst_5 = arith.constant 0.000000e+00 : f32
    %7 = vector.broadcast %cst_5 : f32 to vector<16x512xf32>
    %8 = arith.maximumf %6, %7 : vector<16x512xf32>
    %9 = arith.truncf %8 : vector<16x512xf32> to vector<16x512xbf16>
    %c0_6 = arith.constant 0 : index
    %c0_7 = arith.constant 0 : index
    %10 = vector.load %arg4[%c0_6, %c0_7] : memref<512x384xbf16, #tpu.memory_space<vmem>>, vector<512x384xbf16>
    %cst_8 = arith.constant dense<0.000000e+00> : vector<16x384xf32>
    %11 = tpu.matmul %9, %10, %cst_8 {dimension_numbers = #tpu.dot_dimension_numbers<[1], [0], [0], [1], [0, 0, 1, 1], [], []>} : vector<16x512xbf16>, vector<512x384xbf16>, vector<16x384xf32> -> vector<16x384xf32>
    %c0_9 = arith.constant 0 : index
    %c0_10 = arith.constant 0 : index
    %12 = vector.load %arg5[%c0_9, %c0_10] : memref<1x384xf32, #tpu.memory_space<vmem>>, vector<1x384xf32>
    %13 = vector.broadcast %12 : vector<1x384xf32> to vector<16x384xf32>
    %14 = arith.addf %11, %13 : vector<16x384xf32>
    %cst_11 = arith.constant 0.000000e+00 : f32
    %15 = vector.broadcast %cst_11 : f32 to vector<16x384xf32>
    %16 = arith.maximumf %14, %15 : vector<16x384xf32>
    %17 = arith.truncf %16 : vector<16x384xf32> to vector<16x384xbf16>
    %c0_12 = arith.constant 0 : index
    %c0_13 = arith.constant 0 : index
    %18 = vector.load %arg6[%c0_12, %c0_13] : memref<384x8xbf16, #tpu.memory_space<vmem>>, vector<384x8xbf16>
    %cst_14 = arith.constant dense<0.000000e+00> : vector<16x8xf32>
    %19 = tpu.matmul %17, %18, %cst_14 {dimension_numbers = #tpu.dot_dimension_numbers<[1], [0], [0], [1], [0, 0, 1, 1], [], []>} : vector<16x384xbf16>, vector<384x8xbf16>, vector<16x8xf32> -> vector<16x8xf32>
    %c0_15 = arith.constant 0 : index
    %c0_16 = arith.constant 0 : index
    %20 = vector.load %arg7[%c0_15, %c0_16] : memref<1x8xf32, #tpu.memory_space<vmem>>, vector<1x8xf32>
    %21 = vector.broadcast %20 : vector<1x8xf32> to vector<16x8xf32>
    %22 = arith.addf %19, %21 : vector<16x8xf32>
    %c0_17 = arith.constant 0 : index
    %c0_18 = arith.constant 0 : index
    %23 = vector.load %arg8[%c0_17, %c0_18] : memref<16x8xf32, #tpu.memory_space<vmem>>, vector<16x8xf32>
    tpu.vector_store %arg8[%c0_17, %c0_18], %22 {strides = array<i32>} : memref<16x8xf32, #tpu.memory_space<vmem>>, vector<16x8xf32>,
    return
  }
  func.func @transform_0(%arg0: i32) -> (i32, i32) {
    %c0_i32 = arith.constant 0 : i32
    %c0_i32_0 = arith.constant 0 : i32
    return %arg0, %c0_i32 : i32, i32
  }
  func.func @transform_1(%arg0: i32) -> (i32, i32) {
    %c0_i32 = arith.constant 0 : i32
    %c0_i32_0 = arith.constant 0 : i32
    %c0_i32_1 = arith.constant 0 : i32
    return %c0_i32, %c0_i32_0 : i32, i32
  }
  func.func @transform_2(%arg0: i32) -> (i32, i32) {
    %c0_i32 = arith.constant 0 : i32
    %c0_i32_0 = arith.constant 0 : i32
    %c0_i32_1 = arith.constant 0 : i32
    return %c0_i32, %c0_i32_0 : i32, i32
  }
  func.func @transform_3(%arg0: i32) -> (i32, i32) {
    %c0_i32 = arith.constant 0 : i32
    %c0_i32_0 = arith.constant 0 : i32
    %c0_i32_1 = arith.constant 0 : i32
    return %c0_i32, %c0_i32_0 : i32, i32
  }
  func.func @transform_4(%arg0: i32) -> (i32, i32) {
    %c0_i32 = arith.constant 0 : i32
    %c0_i32_0 = arith.constant 0 : i32
    %c0_i32_1 = arith.constant 0 : i32
    return %c0_i32, %c0_i32_0 : i32, i32
  }
  func.func @transform_5(%arg0: i32) -> (i32, i32) {
    %c0_i32 = arith.constant 0 : i32
    %c0_i32_0 = arith.constant 0 : i32
    %c0_i32_1 = arith.constant 0 : i32
    return %c0_i32, %c0_i32_0 : i32, i32
  }
  func.func @transform_6(%arg0: i32) -> (i32, i32) {
    %c0_i32 = arith.constant 0 : i32
    %c0_i32_0 = arith.constant 0 : i32
    %c0_i32_1 = arith.constant 0 : i32
    return %c0_i32, %c0_i32_0 : i32, i32
  }
  func.func @transform_7(%arg0: i32) -> (i32, i32) {
    %c0_i32 = arith.constant 0 : i32
    %c0_i32_0 = arith.constant 0 : i32
    return %arg0, %c0_i32 : i32, i32
  }
}

</mosaic_0001>

<bundles_post_ra>
// kernel: tpu_custom_call.1
= control target key start
LH: loop header
LB: loop body
LE: loop exit
PB: predicated region body
PF: predicated region fallthrough
CT: control target
= control target key end

     0   :  { %12 = vsyncpa [#allocation3], 0  ;;  %s1767_s24 = smov [#allocation2]   ;;  %s1973_s0 = inlined_call_operand.vmem [shape: f32[16,32], index: 0, kind: input, shape index: {}]   ;;  %s1974_s1 = inlined_call_operand.vmem [shape: bf16[32,512], index: 1, kind: input, shape index: {}]   ;;  %s1975_s2 = inlined_call_operand.vmem [shape: f32[1,512], index: 2, kind: input, shape index: {}]   ;;  %s1976_s3 = inlined_call_operand.hbm [shape: bf16[512,384], index: 3, kind: input, shape index: {}]   ;;  %s1977_s4 = inlined_call_operand.vmem [shape: f32[1,384], index: 4, kind: input, shape index: {}]   ;;  %s1978_s5 = inlined_call_operand.vmem [shape: bf16[384,8], index: 5, kind: input, shape index: {}]   ;;  %s1979_s6 = inlined_call_operand.vmem [shape: f32[1,8], index: 6, kind: input, shape index: {}]   ;;  %s1980_s7 = inlined_call_operand.vmem [shape: f32[16,8], index: 7, kind: output, shape index: {}]  }
   0x1   :  { %s24_s25 = sshll.u32 %s1767_s24, 4  ;;  %s1743_s28 = scalar_lea.hbm %s1976_s3, 12288  ;;  %s25_s25 = int_to_ptr.vmem [resolvable:$true] %s24_s25 }
   0x2   :  { %p1744_p0 = scmp.ne.s32.totalorder %s1976_s3, %s1743_s28  ;;  %p1747_p1 = scmp.lt.u32.totalorder %s1743_s28, %s1976_s3 }
   0x4   :  { %p1749_p2 = pnand %p1747_p1, %p1744_p0 }
   0x6   :  { %1752 = shalt.err (!%p1749_p2)
}
   0x7   :  { %s1753_s10 = scalar_lea.vmem %s25_s25, 12288  ;;  %p1758_p4 = scmp.lt.s32.totalorder %s25_s25, %s25_s25 }
   0x8   :  { %p1754_p3 = scmp.ne.s32.totalorder %s25_s25, %s1753_s10  ;;  %p1759_p5 = scmp.lt.s32.totalorder %s1753_s10, %s1753_s10 }
   0xa   :  { %p1760_p6 = por %p1759_p5, %p1758_p4 }
   0xc   :  { %p1761_p7 = pnand %p1760_p6, %p1754_p3 }
   0xe   :  { %1764 = shalt.err (!%p1761_p7)
}
   0xf   :  { %s1768_s11 = smov 192   ;;  %s1769_s12 = smov 12  }
  0x10   :  { %30 = dma.hbm_to_vmem [thread:$0]  %s1976_s3, 12288, %s25_s25, [#allocation3], %s1768_s11, %s1768_s11, %s1769_s12  }
  0x11   :  { %1765 = dma.done.wait [#allocation3], 12288  }
  0x12   :  { %1766 = vsyncadd [#allocation3], 4294955008  ;;  %v1770_v0 = vmov 0   ;;  %v1579_v1 = vld [vmem:[%s1974_s1 + $0x4] ss:$16 sps:$4 sm:$0xff]   ;;  %v42_v6 = vld [vmem:[%s1973_s0 + $0x8] sm:$0xff]  ;;  %v54_v62 = vlaneseq }
  0x13   :  { %150 = vmatprep.mubr.bf16.mxu0 %v1770_v0  ;;  %193 = vmatprep.mubr.bf16.mxu1 %v1770_v0  ;;  %v1581_v2 = vld [vmem:[%s1974_s1] ss:$16 sps:$4 sm:$0xff]   ;;  %v1582_v3 = vld [vmem:[%s1974_s1 + $0x24] ss:$16 sps:$4 sm:$0xff]   ;;  %v1585_v7 = vld [vmem:[%s1974_s1 + $0xc] ss:$16 sps:$4 sm:$0xff]  }
  0x14   :  { %118 = vmatprep.subr.bf16.mxu0 %v1579_v1  ;;  %v1584_v4 = vld [vmem:[%s1974_s1 + $0x20] ss:$16 sps:$4 sm:$0xff]   ;;  %v1587_v8 = vld [vmem:[%s1974_s1 + $0x8] ss:$16 sps:$4 sm:$0xff]   ;;  %v1588_v9 = vld [vmem:[%s1974_s1 + $0x2c] ss:$16 sps:$4 sm:$0xff]   ;;  %161 = vmatprep.subr.bf16.mxu1 %v1585_v7 }
  0x15   :  { %v41_v5 = vld [vmem:[%s1973_s0] sm:$0xff]  ;;  %119 = vmatpush1.bf16.msra.mxu0 %v1581_v2  ;;  %v1590_v10 = vld [vmem:[%s1974_s1 + $0x28] ss:$16 sps:$4 sm:$0xff]   ;;  %vm114_vm0 = vcmask 261120   ;;  %162 = vmatpush1.bf16.msra.mxu1 %v1587_v8  ;;  %v1597_v17 = vld [vmem:[#allocation2 + $0x30] ss:$12 sps:$4 sm:$0xff]  }
  0x16   :  { %120 = vmatprep.subr.bf16.mxu0 %v1582_v3  ;;  %v43_v11 = vpack.c.bf16 %v42_v6, %v41_v5  ;;  %v1591_v12 = vld [vmem:[#allocation2] ss:$12 sps:$4 sm:$0xff]   ;;  %v1593_v13 = vld [vmem:[#allocation2 + $0x4] ss:$12 sps:$4 sm:$0xff]   ;;  %163 = vmatprep.subr.bf16.mxu1 %v1588_v9  ;;  %v1596_v14 = vld [vmem:[#allocation2 + $0x1c] ss:$12 sps:$4 sm:$0xff]  }
  0x17   :  { %v1594_v15 = vld [vmem:[#allocation2 + $0x18] ss:$12 sps:$4 sm:$0xff]   ;;  %v1599_v16 = vld [vmem:[#allocation2 + $0x34] ss:$12 sps:$4 sm:$0xff]   ;;  %v1608_v26 = vld [vmem:[#allocation2 + $0x7c] ss:$12 sps:$4 sm:$0xff]  }
  0x18   :  { %v1602_v18 = vld [vmem:[#allocation2 + $0x4c] ss:$12 sps:$4 sm:$0xff]   ;;  %v1600_v19 = vld [vmem:[#allocation2 + $0x48] ss:$12 sps:$4 sm:$0xff]   ;;  %v1605_v22 = vld [vmem:[#allocation2 + $0x64] ss:$12 sps:$4 sm:$0xff]  }
  0x19   :  { %121 = vmatpush1.bf16.msra.mxu0 %v1584_v4  ;;  %164 = vmatpush1.bf16.msra.mxu1 %v1590_v10  ;;  %v1618_v20 = vld [vmem:[#allocation2 + $0xc8] ss:$12 sps:$4 sm:$0xff]   ;;  %v1603_v23 = vld [vmem:[#allocation2 + $0x60] ss:$12 sps:$4 sm:$0xff]   ;;  %v1628_v27 = vld [vmem:[#allocation2 + $0xf8] ss:$12 sps:$4 sm:$0xff]  }
  0x1a   :  { %873 = vmatprep.subr.bf16.mxu0 %v1593_v13  ;;  %v1619_v21 = vld [vmem:[#allocation2 + $0x8] ss:$12 sps:$4 sm:$0xff]   ;;  %1470 = vmatprep.subr.bf16.mxu1 %v1618_v20  ;;  %v1623_v24 = vld [vmem:[#allocation2 + $0xe0] ss:$12 sps:$4 sm:$0xff]   ;;  %v1629_v28 = vld [vmem:[#allocation2 + $0x38] ss:$12 sps:$4 sm:$0xff]  }
  0x1b   :  { %v1624_v25 = vld [vmem:[#allocation2 + $0x20] ss:$12 sps:$4 sm:$0xff]   ;;  %v1606_v29 = vld [vmem:[#allocation2 + $0x78] ss:$12 sps:$4 sm:$0xff]   ;;  %v1633_v31 = vld [vmem:[#allocation2 + $0x110] ss:$12 sps:$4 sm:$0xff]  }
  0x1c   :  { %1347 = vmatmul.mubr.msk.bf16.vlgmr.msra.gmra.mrb[0].mxu0 %vm114_vm0, %v43_v11  ;;  %1348 = vmatmul.mubr.msk.bf16.vlgmr.msra.gmra.mrb[0].mxu1 %vm114_vm0, %v43_v11  ;;  %v1611_v30 = vld [vmem:[#allocation2 + $0x94] ss:$12 sps:$4 sm:$0xff]   ;;  %v1634_v32 = vld [vmem:[#allocation2 + $0x50] ss:$12 sps:$4 sm:$0xff]   ;;  %v1614_v34 = vld [vmem:[#allocation2 + $0xac] ss:$12 sps:$4 sm:$0xff]  }
  0x1d   :  { %874 = vmatpush1.bf16.msra.mxu0 %v1591_v12  ;;  %1471 = vmatpush3.bf16.msra.mxu1 %v1619_v21  ;;  %v1609_v33 = vld [vmem:[#allocation2 + $0x90] ss:$12 sps:$4 sm:$0xff]   ;;  %v1638_v35 = vld [vmem:[#allocation2 + $0x128] ss:$12 sps:$4 sm:$0xff]   ;;  %v1643_v38 = vld [vmem:[#allocation2 + $0x140] ss:$12 sps:$4 sm:$0xff]  }
  0x1e   :  { %875 = vmatprep.subr.bf16.mxu0 %v1596_v14  ;;  %1472 = vmatprep.subr.bf16.mxu1 %v1623_v24  ;;  %v1639_v36 = vld [vmem:[#allocation2 + $0x68] ss:$12 sps:$4 sm:$0xff]   ;;  %v1617_v39 = vld [vmem:[#allocation2 + $0xc4] ss:$12 sps:$4 sm:$0xff]   ;;  %v1644_v40 = vld [vmem:[#allocation2 + $0x80] ss:$12 sps:$4 sm:$0xff]  }
  0x1f   :  { %v1612_v37 = vld [vmem:[#allocation2 + $0xa8] ss:$12 sps:$4 sm:$0xff]   ;;  %v1615_v41 = vld [vmem:[#allocation2 + $0xc0] ss:$12 sps:$4 sm:$0xff]   ;;  %v1620_v43 = vld [vmem:[#allocation2 + $0xd8] ss:$12 sps:$4 sm:$0xff]  }
  0x20   :  { %v1622_v42 = vld [vmem:[#allocation2 + $0xdc] ss:$12 sps:$4 sm:$0xff]   ;;  %v1627_v44 = vld [vmem:[#allocation2 + $0xf4] ss:$12 sps:$4 sm:$0xff]   ;;  %v1632_v46 = vld [vmem:[#allocation2 + $0x10c] ss:$12 sps:$4 sm:$0xff]  }
  0x21   :  { %876 = vmatpush1.bf16.msra.mxu0 %v1594_v15  ;;  %1473 = vmatpush3.bf16.msra.mxu1 %v1624_v25  ;;  %v1625_v45 = vld [vmem:[#allocation2 + $0xf0] ss:$12 sps:$4 sm:$0xff]   ;;  %v1630_v47 = vld [vmem:[#allocation2 + $0x108] ss:$12 sps:$4 sm:$0xff]   ;;  %v1635_v49 = vld [vmem:[#allocation2 + $0x120] ss:$12 sps:$4 sm:$0xff]  }
  0x22   :  { %877 = vmatprep.subr.bf16.mxu0 %v1599_v16  ;;  %1474 = vmatprep.subr.bf16.mxu1 %v1628_v27  ;;  %v1637_v48 = vld [vmem:[#allocation2 + $0x124] ss:$12 sps:$4 sm:$0xff]   ;;  %v1642_v50 = vld [vmem:[#allocation2 + $0x13c] ss:$12 sps:$4 sm:$0xff]   ;;  %v1647_v52 = vld [vmem:[#allocation2 + $0x154] ss:$12 sps:$4 sm:$0xff]  }
  0x23   :  { %v1640_v51 = vld [vmem:[#allocation2 + $0x138] ss:$12 sps:$4 sm:$0xff]   ;;  %v1645_v54 = vld [vmem:[#allocation2 + $0x150] ss:$12 sps:$4 sm:$0xff]   ;;  %v1650_v58 = vld [vmem:[#allocation2 + $0x168] ss:$12 sps:$4 sm:$0xff]  }
  0x24   :  { %v1648_v53 = vld [vmem:[#allocation2 + $0x158] ss:$12 sps:$4 sm:$0xff]   ;;  %v1653_v57 = vld [vmem:[#allocation2 + $0x170] ss:$12 sps:$4 sm:$0xff]   ;;  %v1658_v61 = vld [vmem:[#allocation2 + $0x248] ss:$12 sps:$4 sm:$0xff]  }
  0x25   :  { %878 = vmatpush1.bf16.msra.mxu0 %v1597_v17  ;;  %1475 = vmatpush3.bf16.msra.mxu1 %v1629_v28  ;;  %v1649_v55 = vld [vmem:[#allocation2 + $0x98] ss:$12 sps:$4 sm:$0xff]   ;;  %v1654_v59 = vld [vmem:[#allocation2 + $0xb0] ss:$12 sps:$4 sm:$0xff]   ;;  %v1855_v63 = vshrl.u32 %v54_v62, 7  ;;  %vm1772_vm1 = vmmov 0  }
  0x26   :  { %879 = vmatprep.subr.bf16.mxu0 %v1602_v18  ;;  %1476 = vmatprep.subr.bf16.mxu1 %v1633_v31  ;;  %v1652_v56 = vld [vmem:[#allocation2 + $0x16c] ss:$12 sps:$4 sm:$0xff]   ;;  %v1657_v60 = vld [vmem:[#allocation2 + $0x184] ss:$12 sps:$4 sm:$0xff]   ;;  %v52_v1 = vld [vmem:[%s1975_s2] sm:$0xf] }
  0x27   :  { %v56_v0 = vsub.s32 0, %v1855_v63  ;;  %v60_v2 = vsub.s32 1, %v1855_v63  ;;  %v64_v4 = vsub.s32 2, %v1855_v63  ;;  %v68_v6 = vsub.s32 3, %v1855_v63  ;;  %v1655_v31 = vld [vmem:[#allocation2 + $0x180] ss:$12 sps:$4 sm:$0xff]  }
  0x28   :  { %v1689_v62 = vld [vmem:[#allocation2 + $0x218] ss:$12 sps:$4 sm:$0xff]   ;;  %v1736_v63 = vld [vmem:[%s1978_s5 + $0x88] sm:$0xff]   ;;  %vm1331_vm2 = vcmask 64512  }
  0x29   :  { %880 = vmatpush1.bf16.msra.mxu0 %v1600_v19  ;;  %1477 = vmatpush3.bf16.msra.mxu1 %v1634_v32  ;;  %v57_v3 = vrot.slane %v52_v1, %v56_v0  ;;  %v61_v5 = vrot.slane %v52_v1, %v60_v2  ;;  %v65_v10 = vrot.slane %v52_v1, %v64_v4  ;;  %v1659_v32 = vld [vmem:[#allocation2 + $0x188] ss:$12 sps:$4 sm:$0xff]  }
  0x2a   :  { %881 = vmatprep.subr.bf16.mxu0 %v1605_v22  ;;  %1478 = vmatprep.subr.bf16.mxu1 %v1638_v35  ;;  %v69_v13 = vrot.slane %v52_v1, %v68_v6  ;;  %v1662_v35 = vld [vmem:[#allocation2 + $0x19c] ss:$12 sps:$4 sm:$0xff]   ;;  %v1692_v1 = vld [vmem:[#allocation2 + $0x22c] ss:$12 sps:$4 sm:$0xff]  }
  0x2b   :  { %v1694_v6 = vld [vmem:[#allocation2 + $0x230] ss:$12 sps:$4 sm:$0xff]  }
  0x2d   :  { %882 = vmatpush1.bf16.msra.mxu0 %v1603_v23  ;;  %1479 = vmatpush3.bf16.msra.mxu1 %v1639_v36  ;;  %v1663_v36 = vld [vmem:[#allocation2 + $0x260] ss:$12 sps:$4 sm:$0xff]  }
  0x2e   :  { %883 = vmatprep.subr.bf16.mxu0 %v1608_v26  ;;  %1480 = vmatprep.subr.bf16.mxu1 %v1643_v38 }
  0x31   :  { %884 = vmatpush1.bf16.msra.mxu0 %v1606_v29  ;;  %1481 = vmatpush3.bf16.msra.mxu1 %v1644_v40  ;;  %v1660_v40 = vld [vmem:[#allocation2 + $0x198] ss:$12 sps:$4 sm:$0xff]  }
  0x32   :  { %885 = vmatprep.subr.bf16.mxu0 %v1611_v30  ;;  %1482 = vmatprep.subr.bf16.mxu1 %v1648_v53  ;;  %v1675_v53 = vld [vmem:[#allocation2 + $0x1e0] ss:$12 sps:$4 sm:$0xff]  }
  0x35   :  { %886 = vmatpush1.bf16.msra.mxu0 %v1609_v33  ;;  %1483 = vmatpush3.bf16.msra.mxu1 %v1649_v55  ;;  %v1682_v55 = vld [vmem:[#allocation2 + $0x1fc] ss:$12 sps:$4 sm:$0xff]  }
  0x36   :  { %887 = vmatprep.subr.bf16.mxu0 %v1614_v34  ;;  %1484 = vmatprep.subr.bf16.mxu1 %v1653_v57  ;;  %v1680_v57 = vld [vmem:[#allocation2 + $0x1f8] ss:$12 sps:$4 sm:$0xff]  }
  0x39   :  { %888 = vmatpush1.bf16.msra.mxu0 %v1612_v37  ;;  %1485 = vmatpush3.bf16.msra.mxu1 %v1654_v59  ;;  %v1687_v59 = vld [vmem:[#allocation2 + $0x214] ss:$12 sps:$4 sm:$0xff]  }
  0x3a   :  { %889 = vmatprep.subr.bf16.mxu0 %v1617_v39  ;;  %1492 = vmatprep.subr.bf16.mxu1 %v1658_v61  ;;  %v1685_v61 = vld [vmem:[#allocation2 + $0x210] ss:$12 sps:$4 sm:$0xff]  }
  0x3d   :  { %890 = vmatpush1.bf16.msra.mxu0 %v1615_v41  ;;  %v1664_v41 = vld [vmem:[#allocation2 + $0x1a0] ss:$12 sps:$4 sm:$0xff]  }
  0x3e   :  { %891 = vmatprep.subr.bf16.mxu0 %v1622_v42 }
  0x41   :  { %892 = vmatpush1.bf16.msra.mxu0 %v1620_v43  ;;  %v1667_v43 = vld [vmem:[#allocation2 + $0x1b4] ss:$12 sps:$4 sm:$0xff]  }
  0x42   :  { %893 = vmatprep.subr.bf16.mxu0 %v1627_v44  ;;  %v1668_v44 = vld [vmem:[#allocation2 + $0x278] ss:$12 sps:$4 sm:$0xff]  }
  0x45   :  { %894 = vmatpush1.bf16.msra.mxu0 %v1625_v45  ;;  %v1665_v45 = vld [vmem:[#allocation2 + $0x1b0] ss:$12 sps:$4 sm:$0xff]  }
  0x46   :  { %895 = vmatprep.subr.bf16.mxu0 %v1632_v46  ;;  %v1669_v46 = vld [vmem:[#allocation2 + $0x1b8] ss:$12 sps:$4 sm:$0xff]  }
  0x49   :  { %896 = vmatpush1.bf16.msra.mxu0 %v1630_v47  ;;  %v1672_v47 = vld [vmem:[#allocation2 + $0x1cc] ss:$12 sps:$4 sm:$0xff]  }
  0x4a   :  { %897 = vmatprep.subr.bf16.mxu0 %v1637_v48  ;;  %v1673_v48 = vld [vmem:[#allocation2 + $0x290] ss:$12 sps:$4 sm:$0xff]  }
  0x4d   :  { %898 = vmatpush1.bf16.msra.mxu0 %v1635_v49  ;;  %v1670_v49 = vld [vmem:[#allocation2 + $0x1c8] ss:$12 sps:$4 sm:$0xff]  }
  0x4e   :  { %899 = vmatprep.subr.bf16.mxu0 %v1642_v50  ;;  %v1674_v50 = vld [vmem:[#allocation2 + $0x1d0] ss:$12 sps:$4 sm:$0xff]  }
  0x51   :  { %900 = vmatpush1.bf16.msra.mxu0 %v1640_v51  ;;  %v1677_v51 = vld [vmem:[#allocation2 + $0x1e4] ss:$12 sps:$4 sm:$0xff]  }
  0x52   :  { %901 = vmatprep.subr.bf16.mxu0 %v1647_v52  ;;  %v1678_v52 = vld [vmem:[#allocation2 + $0x2a8] ss:$12 sps:$4 sm:$0xff]  }
  0x55   :  { %902 = vmatpush1.bf16.msra.mxu0 %v1645_v54  ;;  %v1679_v54 = vld [vmem:[#allocation2 + $0x1e8] ss:$12 sps:$4 sm:$0xff]  }
  0x56   :  { %903 = vmatprep.subr.bf16.mxu0 %v1652_v56  ;;  %v1683_v56 = vld [vmem:[#allocation2 + $0x2c0] ss:$12 sps:$4 sm:$0xff]  }
  0x59   :  { %904 = vmatpush1.bf16.msra.mxu0 %v1650_v58  ;;  %v1684_v58 = vld [vmem:[#allocation2 + $0x200] ss:$12 sps:$4 sm:$0xff]  }
  0x5a   :  { %916 = vmatprep.subr.bf16.mxu0 %v1657_v60  ;;  %v1688_v60 = vld [vmem:[#allocation2 + $0x2d8] ss:$12 sps:$4 sm:$0xff]  }
  0xef   :  { %v152_v7 = vpop.f32.mrb[0].mxu0  ;;  %v195_v17 = vpop.f32.mrb[0].mxu1 }
  0xf0   :  { %v153_v8 = vadd.f32 %v152_v7, %v57_v3  ;;  %v154_v9 = vpop.f32.mrb[1].mxu0  ;;  %v196_v20 = vadd.f32 %v195_v17, %v65_v10  ;;  %v197_v21 = vpop.f32.mrb[1].mxu1  ;;  %v1697_v7 = vld [vmem:[#allocation2 + $0x244] ss:$12 sps:$4 sm:$0xff]   ;;  %v1712_v17 = vld [vmem:[#allocation2 + $0x2bc] ss:$12 sps:$4 sm:$0xff]  }
  0xf1   :  { %v155_v11 = vadd.f32 %v154_v9, %v61_v5  ;;  %v156_v12 = vpop.f32.mrb[2].mxu0  ;;  %v198_v24 = vadd.f32 %v197_v21, %v69_v13  ;;  %v199_v25 = vpop.f32.mrb[2].mxu1  ;;  %v1700_v9 = vld [vmem:[#allocation2 + $0x25c] ss:$12 sps:$4 sm:$0xff]   ;;  %v1718_v21 = vld [vmem:[#allocation2 + $0x2ec] ss:$12 sps:$4 sm:$0xff]  }
  0xf2   :  { %v157_v14 = vadd.f32 %v156_v12, %v57_v3  ;;  %v158_v15 = vpop.f32.mrb[3].mxu0  ;;  %v204_v18 = vmax.f32 %v153_v8, 0.0  ;;  %v206_v27 = vmax.f32 %v196_v20, 0.0  ;;  %v200_v28 = vadd.f32 %v199_v25, %v65_v10  ;;  %v201_v29 = vpop.f32.mrb[3].mxu1  ;;  %v1693_v3 = vld [vmem:[#allocation2 + $0x2f0] ss:$12 sps:$4 sm:$0xff]  }
  0xf3   :  { %v159_v16 = vadd.f32 %v158_v15, %v61_v5  ;;  %v205_v22 = vmax.f32 %v155_v11, 0.0  ;;  %v207_v33 = vmax.f32 %v198_v24, 0.0  ;;  %v202_v34 = vadd.f32 %v201_v29, %v69_v13  ;;  %v1690_v5 = vld [vmem:[#allocation2 + $0x228] ss:$12 sps:$4 sm:$0xff]   ;;  %v1695_v8 = vld [vmem:[#allocation2 + $0x240] ss:$12 sps:$4 sm:$0xff]  }
  0xf4   :  { %v208_v19 = vmax.f32 %v157_v14, 0.0  ;;  %v210_v37 = vmax.f32 %v200_v28, 0.0  ;;  %v1698_v10 = vld [vmem:[#allocation2 + $0x258] ss:$12 sps:$4 sm:$0xff]   ;;  %v1703_v11 = vld [vmem:[#allocation2 + $0x274] ss:$12 sps:$4 sm:$0xff]  }
  0xf5   :  { %v209_v23 = vmax.f32 %v159_v16, 0.0  ;;  %v211_v38 = vmax.f32 %v202_v34, 0.0  ;;  %v1701_v12 = vld [vmem:[#allocation2 + $0x270] ss:$12 sps:$4 sm:$0xff]   ;;  %v1706_v13 = vld [vmem:[#allocation2 + $0x28c] ss:$12 sps:$4 sm:$0xff]  }
  0xf6   :  { %v212_v26 = vpack.c.bf16 %v208_v19, %v204_v18  ;;  %v1870_v39 = vpack.c.bf16 %v210_v37, %v206_v27  ;;  %v1704_v14 = vld [vmem:[#allocation2 + $0x288] ss:$12 sps:$4 sm:$0xff]   ;;  %v1709_v15 = vld [vmem:[#allocation2 + $0x2a4] ss:$12 sps:$4 sm:$0xff]   ;;  %v1707_v16 = vld [vmem:[#allocation2 + $0x2a0] ss:$12 sps:$4 sm:$0xff]  }
  0xf7   :  { %v213_v30 = vpack.c.bf16 %v209_v23, %v205_v22  ;;  %v215_v42 = vpack.c.bf16 %v211_v38, %v207_v33  ;;  %v1710_v18 = vld [vmem:[#allocation2 + $0x2b8] ss:$12 sps:$4 sm:$0xff]   ;;  %v1715_v19 = vld [vmem:[#allocation2 + $0x2d4] ss:$12 sps:$4 sm:$0xff]   ;;  %v1713_v20 = vld [vmem:[#allocation2 + $0x2d0] ss:$12 sps:$4 sm:$0xff]  }
  0xf8   :  { %v1716_v22 = vld [vmem:[#allocation2 + $0x2e8] ss:$12 sps:$4 sm:$0xff]   ;;  %v1719_v23 = vld [vmem:[%s1978_s5 + $0x40] sm:$0xff]   ;;  %v1725_v29 = vld [vmem:[%s1978_s5 + $0x58] sm:$0xff]  }
  0xf9   :  { %905 = vmatprep.mubr.bf16.mxu0 %v213_v30  ;;  %991 = vmatprep.mubr.bf16.mxu1 %v213_v30  ;;  %v1720_v24 = vld [vmem:[%s1978_s5] sm:$0xff]   ;;  %v1721_v25 = vld [vmem:[%s1978_s5 + $0x48] sm:$0xff]   ;;  %v1723_v27 = vld [vmem:[%s1978_s5 + $0x50] sm:$0xff]  }
  0xfa   :  { %906 = vmatmul.mubr.bf16.vlgmr.msra.gmra.mrb[4].mxu0 %v212_v26  ;;  %992 = vmatmul.mubr.bf16.vlgmr.msra.gmra.mrb[4].mxu1 %v212_v26  ;;  %v1722_v26 = vld [vmem:[%s1978_s5 + $0x8] sm:$0xff]   ;;  %v1724_v28 = vld [vmem:[%s1978_s5 + $0x10] sm:$0xff]   ;;  %v1726_v30 = vld [vmem:[%s1978_s5 + $0x18] sm:$0xff]  }
  0xfb   :  { %917 = vmatpush1.bf16.msra.mxu0 %v1655_v31  ;;  %1493 = vmatpush3.bf16.msra.mxu1 %v1659_v32  ;;  %v1727_v31 = vld [vmem:[%s1978_s5 + $0x60] sm:$0xff]   ;;  %v1729_v33 = vld [vmem:[%s1978_s5 + $0x68] sm:$0xff]   ;;  %v1733_v37 = vld [vmem:[%s1978_s5 + $0x78] sm:$0xff]  }
  0xfc   :  { %918 = vmatprep.subr.bf16.mxu0 %v1662_v35  ;;  %1494 = vmatprep.subr.bf16.mxu1 %v1663_v36  ;;  %v1728_v32 = vld [vmem:[%s1978_s5 + $0x20] sm:$0xff]   ;;  %v1730_v34 = vld [vmem:[%s1978_s5 + $0x28] sm:$0xff]   ;;  %v1731_v35 = vld [vmem:[%s1978_s5 + $0x70] sm:$0xff]  }
  0xfd   :  { %1032 = vmatprep.mubr.bf16.mxu1 %v215_v42  ;;  %948 = vmatprep.mubr.bf16.mxu0 %v215_v42  ;;  %v1732_v36 = vld [vmem:[%s1978_s5 + $0x30] sm:$0xff]   ;;  %v1734_v38 = vld [vmem:[%s1978_s5 + $0x38] sm:$0xff]  }
  0xff   :  { %919 = vmatpush1.bf16.msra.mxu0 %v1660_v40  ;;  %1495 = vmatpush3.bf16.msra.mxu1 %v1664_v41 }
 0x100   :  { %920 = vmatprep.subr.bf16.mxu0 %v1667_v43  ;;  %1496 = vmatprep.subr.bf16.mxu1 %v1668_v44 }
 0x103   :  { %921 = vmatpush1.bf16.msra.mxu0 %v1665_v45  ;;  %1497 = vmatpush3.bf16.msra.mxu1 %v1669_v46  ;;  %v344_v46 = vld [vmem:[%s1977_s4] sm:$0x7] }
 0x104   :  { %922 = vmatprep.subr.bf16.mxu0 %v1672_v47  ;;  %1498 = vmatprep.subr.bf16.mxu1 %v1673_v48  ;;  %v357_v47 = vrot.slane %v344_v46, %v64_v4 }
 0x107   :  { %923 = vmatpush1.bf16.msra.mxu0 %v1670_v49  ;;  %1499 = vmatpush3.bf16.msra.mxu1 %v1674_v50 }
 0x108   :  { %924 = vmatprep.subr.bf16.mxu0 %v1677_v51  ;;  %1500 = vmatprep.subr.bf16.mxu1 %v1678_v52 }
 0x10b   :  { %925 = vmatpush1.bf16.msra.mxu0 %v1675_v53  ;;  %1501 = vmatpush3.bf16.msra.mxu1 %v1679_v54 }
 0x10c   :  { %926 = vmatprep.subr.bf16.mxu0 %v1682_v55  ;;  %1502 = vmatprep.subr.bf16.mxu1 %v1683_v56 }
 0x10f   :  { %927 = vmatpush1.bf16.msra.mxu0 %v1680_v57  ;;  %1503 = vmatpush3.bf16.msra.mxu1 %v1684_v58 }
 0x110   :  { %928 = vmatprep.subr.bf16.mxu0 %v1687_v59  ;;  %1504 = vmatprep.subr.bf16.mxu1 %v1688_v60 }
 0x113   :  { %929 = vmatpush1.bf16.msra.mxu0 %v1685_v61  ;;  %1505 = vmatpush3.bf16.msra.mxu1 %v1689_v62  ;;  %v349_v61 = vrot.slane %v344_v46, %v56_v0  ;;  %v353_v62 = vrot.slane %v344_v46, %v60_v2  ;;  %v1735_v0 = vld [vmem:[%s1978_s5 + $0x80] sm:$0xff]   ;;  %v1737_v2 = vld [vmem:[%s1978_s5 + $0x90] sm:$0xff]  }
 0x114   :  { %930 = vmatprep.subr.bf16.mxu0 %v1692_v1  ;;  %1506 = vmatprep.subr.bf16.mxu1 %v1693_v3 }
 0x117   :  { %931 = vmatpush1.bf16.msra.mxu0 %v1690_v5  ;;  %1507 = vmatpush3.bf16.msra.mxu1 %v1694_v6 }
 0x118   :  { %932 = vmatprep.subr.bf16.mxu0 %v1697_v7  ;;  %1514 = vmatprep.subr.bf16.mxu1 %v1719_v23 }
 0x11a   :  { %1033 = vmatmul.mubr.bf16.vlgmr.msra.gmra.mrb[8].mxu1 %v1870_v39 }
 0x11b   :  { %933 = vmatpush1.bf16.msra.mxu0 %v1695_v8  ;;  %1515 = vmatpush3.bf16.msra.mxu1 %v1720_v24 }
 0x11c   :  { %934 = vmatprep.subr.bf16.mxu0 %v1700_v9  ;;  %1516 = vmatprep.subr.bf16.mxu1 %v1721_v25 }
 0x11f   :  { %935 = vmatpush1.bf16.msra.mxu0 %v1698_v10  ;;  %1517 = vmatpush3.bf16.msra.mxu1 %v1722_v26 }
 0x120   :  { %936 = vmatprep.subr.bf16.mxu0 %v1703_v11  ;;  %1518 = vmatprep.subr.bf16.mxu1 %v1723_v27  ;;  %v1445_v27 = vld [vmem:[%s1979_s6] ss:$0 sm:$0xff] }
 0x123   :  { %937 = vmatpush1.bf16.msra.mxu0 %v1701_v12  ;;  %1519 = vmatpush3.bf16.msra.mxu1 %v1724_v28 }
 0x124   :  { %938 = vmatprep.subr.bf16.mxu0 %v1706_v13  ;;  %1520 = vmatprep.subr.bf16.mxu1 %v1725_v29 }
 0x127   :  { %939 = vmatpush1.bf16.msra.mxu0 %v1704_v14  ;;  %1521 = vmatpush3.bf16.msra.mxu1 %v1726_v30 }
 0x128   :  { %940 = vmatprep.subr.bf16.mxu0 %v1709_v15  ;;  %1522 = vmatprep.subr.bf16.mxu1 %v1727_v31 }
 0x12b   :  { %941 = vmatpush1.bf16.msra.mxu0 %v1707_v16  ;;  %1523 = vmatpush3.bf16.msra.mxu1 %v1728_v32  ;;  %v1738_v16 = vld [vmem:[%s1978_s5 + $0x98] sm:$0xff]  }
 0x12c   :  { %942 = vmatprep.subr.bf16.mxu0 %v1712_v17  ;;  %1524 = vmatprep.subr.bf16.mxu1 %v1729_v33  ;;  %v1739_v17 = vld [vmem:[%s1978_s5 + $0xa0] sm:$0xff]  }
 0x12f   :  { %943 = vmatpush1.bf16.msra.mxu0 %v1710_v18  ;;  %1525 = vmatpush3.bf16.msra.mxu1 %v1730_v34  ;;  %v1740_v18 = vld [vmem:[%s1978_s5 + $0xa8] sm:$0xff]  }
 0x130   :  { %944 = vmatprep.subr.bf16.mxu0 %v1715_v19  ;;  %1526 = vmatprep.subr.bf16.mxu1 %v1731_v35  ;;  %v1741_v19 = vld [vmem:[%s1978_s5 + $0xb0] sm:$0xff]  }
 0x133   :  { %945 = vmatpush1.bf16.msra.mxu0 %v1713_v20  ;;  %1527 = vmatpush3.bf16.msra.mxu1 %v1732_v36  ;;  %v1742_v20 = vld [vmem:[%s1978_s5 + $0xb8] sm:$0xff]  }
 0x134   :  { %946 = vmatprep.subr.bf16.mxu0 %v1718_v21  ;;  %1528 = vmatprep.subr.bf16.mxu1 %v1733_v37 }
 0x137   :  { %947 = vmatpush1.bf16.msra.mxu0 %v1716_v22  ;;  %1529 = vmatpush3.bf16.msra.mxu1 %v1734_v38 }
 0x13a   :  { %949 = vmatmul.mubr.bf16.vlgmr.msra.gmra.mrb[4].mxu0 %v1870_v39  ;;  %v1771_v39 = vmov 0.0  }
 0x13b   :  { %1545 = vmatprep.subr.bf16.mxu1 %v1771_v39 }
 0x1cd   :  { %v1486_v40 = vpop.f32.mrb[4].mxu1 }
 0x1ce   :  { %v1487_v41 = vpop.f32.mrb[5].mxu1 }
 0x1cf   :  { %v1488_v42 = vadd.f32 %v1487_v41, %v1486_v40  ;;  %v1489_v43 = vpop.f32.mrb[6].mxu1 }
 0x1d0   :  { %v1490_v44 = vpop.f32.mrb[7].mxu1 }
 0x1d1   :  { %v1491_v45 = vadd.f32 %v1490_v44, %v1489_v43  ;;  %v994_v50 = vadd.f32 %v1488_v42, %v357_v47 }
 0x1d3   :  { %v997_v54 = vadd.f32 %v1491_v45, %v357_v47 }
 0x1ed   :  { %v1508_v48 = vpop.f32.mrb[8].mxu1 }
 0x1ee   :  { %v1509_v49 = vpop.f32.mrb[9].mxu1 }
 0x1ef   :  { %v1510_v51 = vadd.f32 %v1509_v49, %v1508_v48  ;;  %v1511_v52 = vpop.f32.mrb[10].mxu1 }
 0x1f0   :  { %v1512_v53 = vpop.f32.mrb[11].mxu1 }
 0x1f1   :  { %v1035_v55 = vadd.f32 %v1510_v51, %v994_v50  ;;  %v1513_v56 = vadd.f32 %v1512_v53, %v1511_v52 }
 0x1f3   :  { %v1038_v57 = vadd.f32 %v1513_v56, %v997_v54  ;;  %v1043_v58 = vmax.f32 %v1035_v55, 0.0 }
 0x1f5   :  { %v1046_v59 = vmax.f32 %v1038_v57, 0.0 }
 0x1f7   :  { %v1049_v60 = vpack.c.bf16 %v1046_v59, %v1043_v58 }
 0x20d   :  { %v950_v4 = vpop.f32.mrb[4].mxu0 }
 0x20e   :  { %v1565_v1 = vadd.f32 %v950_v4, %v349_v61  ;;  %v952_v3 = vpop.f32.mrb[5].mxu0 }
 0x20f   :  { %v1566_v5 = vadd.f32 %v952_v3, %v353_v62  ;;  %v954_v6 = vpop.f32.mrb[6].mxu0 }
 0x210   :  { %v1567_v7 = vadd.f32 %v954_v6, %v349_v61  ;;  %v956_v8 = vpop.f32.mrb[7].mxu0  ;;  %v1041_v10 = vmax.f32 %v1565_v1, 0.0 }
 0x211   :  { %v1568_v9 = vadd.f32 %v956_v8, %v353_v62  ;;  %v1042_v12 = vmax.f32 %v1566_v5, 0.0 }
 0x212   :  { %v1044_v11 = vmax.f32 %v1567_v7, 0.0 }
 0x213   :  { %v1045_v13 = vmax.f32 %v1568_v9, 0.0 }
 0x214   :  { %v1047_v14 = vpack.c.bf16 %v1044_v11, %v1041_v10 }
 0x215   :  { %v1048_v15 = vpack.c.bf16 %v1045_v13, %v1042_v12 }
 0x217   :  { %1281 = vmatprep.mubr.bf16.mxu1 %v1048_v15 }
 0x218   :  { %1282 = vmatmul.mubr.bf16.vlgmr.msra.gmra.mrb[12].mxu1 %v1047_v14 }
 0x219   :  { %1546 = vmatpush3.bf16.msra.mxu1 %v1735_v0  ;;  %1561 = vmatprep.mubr.msk.bf16.mxu1 %vm1772_vm1, %v1771_v39 }
 0x21a   :  { %1547 = vmatprep.subr.bf16.mxu1 %v1771_v39 }
 0x21d   :  { %1548 = vmatpush3.bf16.msra.mxu1 %v1736_v63 }
 0x21e   :  { %1549 = vmatprep.subr.bf16.mxu1 %v1771_v39 }
 0x221   :  { %1550 = vmatpush3.bf16.msra.mxu1 %v1737_v2 }
 0x222   :  { %1551 = vmatprep.subr.bf16.mxu1 %v1771_v39 }
 0x225   :  { %1552 = vmatpush3.bf16.msra.mxu1 %v1738_v16 }
 0x226   :  { %1553 = vmatprep.subr.bf16.mxu1 %v1771_v39 }
 0x229   :  { %1554 = vmatpush3.bf16.msra.mxu1 %v1739_v17 }
 0x22a   :  { %1555 = vmatprep.subr.bf16.mxu1 %v1771_v39 }
 0x22d   :  { %1556 = vmatpush3.bf16.msra.mxu1 %v1740_v18 }
 0x22e   :  { %1557 = vmatprep.subr.bf16.mxu1 %v1771_v39 }
 0x231   :  { %1558 = vmatpush3.bf16.msra.mxu1 %v1741_v19 }
 0x232   :  { %1559 = vmatprep.subr.bf16.mxu1 %v1771_v39 }
 0x235   :  { %1560 = vmatpush3.bf16.msra.mxu1 %v1742_v20 }
 0x238   :  { %1562 = vmatmul.mubr.bf16.vlgmr.msra.gmra.mrb[16].mxu1 %v1049_v60 }
 0x2eb   :  { %v1530_v21 = vpop.f32.mrb[12].mxu1 }
 0x2ec   :  { %v1531_v22 = vpop.f32.mrb[13].mxu1 }
 0x2ed   :  { %v1532_v23 = vadd.f32 %v1531_v22, %v1530_v21  ;;  %v1533_v24 = vpop.f32.mrb[14].mxu1 }
 0x2ee   :  { %v1534_v25 = vpop.f32.mrb[15].mxu1 }
 0x2ef   :  { %v1535_v26 = vadd.f32 %v1534_v25, %v1533_v24  ;;  %v1284_v28 = vadd.f32 %v1532_v23, %v1445_v27 }
 0x2f1   :  { %v1287_v32 = vadd.f32 %v1535_v26, %v1445_v27 }
 0x30b   :  { %v1324_v29 = vpop.f32.mrb[16].mxu1 }
 0x30c   :  { %v1325_v30 = vadd.f32 %v1324_v29, %v1284_v28  ;;  %v1563_v31 = vpop.f32.mrb[17].mxu1 }
 0x30d   :  { %v1327_v33 = vpop.f32.mrb[18].mxu1 }
 0x30e   :  { %1332 = vst.msk [vmem:[%s1980_s7] sm:$0xff] %vm1331_vm2, %v1325_v30  ;;  %v1328_v34 = vadd.f32 %v1327_v33, %v1287_v32  ;;  %v1564_v35 = vpop.f32.mrb[19].mxu1 }
 0x310   :  { %1333 = vst.msk [vmem:[%s1980_s7 + $0x8] sm:$0xff] %vm1331_vm2, %v1328_v34 }
 0x311   :  { %1338 = vsyncpa [#allocation3], 1 }

</bundles_post_ra>
